<compile_context>
chip_gen: v6e
topology: v6e:2x2x1
jax: 0.10.0
libtpu: 0.0.40
codegen_flags: <defaults>
</compile_context>

<pallas_src>
import functools

import jax
import jax.numpy as jnp
from jax.experimental import pallas as pl
from jax.experimental.pallas import tpu as pltpu


LANE = 128


def _round_up(x, m):
    return ((x + m - 1) // m) * m


def _default_mxu_dtype():
    """bf16 matmul inputs on v6e / v7x (f32 accumulate); f32 on v5e/older."""
    try:
        kind = jax.devices()[0].device_kind.lower()
    except Exception:
        return jnp.float32
    if any(t in kind for t in ("v2", "v3", "v4", "v5")):
        return jnp.float32
    return jnp.bfloat16


def scalar_corrector_kernel(u_ref, w1_ref, b1_ref, w2_ref, b2_ref,
                            w3_ref, b3_ref, ot_ref, *, mxu_dtype):
    """One batch tile of the 3-layer tanh MLP, computed feature-major.

    u_ref is the naturally contiguous [TB, dim] HBM block; the transpose to
    feature-major is folded into the first matmul (W1 @ u^T), so activations
    live as [features, TB] with batch on the 128-lane axis.
    """
    x = u_ref[...]                                            # [TB, dim]
    # layer 1: h = tanh(W1 @ x^T + b1)                        -> [hid, TB]
    h = jnp.tanh(
        jnp.dot(w1_ref[...], x.T, preferred_element_type=jnp.float32)
        + b1_ref[...]
    )
    # layer 2: h = tanh(W2 @ h + b2)                          -> [hid, TB]
    h = jnp.tanh(
        jnp.dot(w2_ref[...], h.astype(mxu_dtype),
                preferred_element_type=jnp.float32)
        + b2_ref[...]
    )
    # layer 3 (no activation): out^T = W3 @ h + b3            -> [dim_out, TB]
    ot_ref[...] = (
        jnp.dot(w3_ref[...], h.astype(mxu_dtype),
                preferred_element_type=jnp.float32)
        + b3_ref[...]
    ).astype(ot_ref.dtype)


@functools.partial(jax.jit, static_argnames=("batch_tile", "mxu_dtype"))
def scalar_corrector_forward(u, params, *, batch_tile=8192, mxu_dtype=None):
    """u: [B, dim] float32; params in PyTorch layout (W: [out,in], b: [out,1]).

    batch_tile: lane-axis tile for the batch grid (multiple of 128).
    mxu_dtype : dtype of the matmul *inputs* (accumulation is always f32).
                None -> auto (bf16 on v6e/v7x, f32 on v5e and older).
    Returns [B, dim_out] float32.
    """
    if mxu_dtype is None:
        mxu_dtype = _default_mxu_dtype()
    assert batch_tile % LANE == 0, "batch_tile must be a multiple of 128 lanes"

    B, dim = u.shape
    hid = params["W1"].shape[0]          # 2 * dim
    dim_out = params["W3"].shape[0]

    # --- batch tiling ------------------------------------------------------
    padded_B = _round_up(B, LANE)
    TB = min(batch_tile, padded_B)
    # Keep >=4 grid steps (v7x megacore + pipelining) as long as tiles stay
    # >=512 lanes wide (below that per-step overhead dominates).
    tb_4steps = _round_up(-(-padded_B // 4), LANE)
    if tb_4steps >= 512:
        TB = min(TB, tb_4steps)
    padded_B = _round_up(padded_B, TB)
    grid = (padded_B // TB,)

    # --- operand prep: cast FIRST so the (optional) pad copies narrow bytes -
    u_in = u.astype(mxu_dtype)
    if padded_B != B:
        # Zero rows -> tanh(bias) on padded columns stays finite; sliced away.
        u_in = jnp.pad(u_in, ((0, padded_B - B), (0, 0)))

    w1 = params["W1"].astype(mxu_dtype)
    w2 = params["W2"].astype(mxu_dtype)
    w3 = params["W3"].astype(mxu_dtype)
    b1 = params["b1"].astype(jnp.float32)
    b2 = params["b2"].astype(jnp.float32)
    b3 = params["b3"].astype(jnp.float32)

    # --- scoped VMEM: double-buffered streams + f32 intermediates + margin --
    in_itemsize = jnp.dtype(mxu_dtype).itemsize
    est = (2 * TB * dim * in_itemsize            # streamed u tiles (x2 bufs)
           + 2 * TB * dim_out * 4                # streamed out tiles
           + 3 * TB * hid * 4                    # live f32 intermediates
           + (hid * dim + hid * hid + dim_out * hid) * in_itemsize
           + (2 * hid + dim_out) * 4)
    vmem_limit = int(min(max(2 * est, 32 * 1024 * 1024), 48 * 1024 * 1024))

    kernel = functools.partial(scalar_corrector_kernel, mxu_dtype=mxu_dtype)

    outT = pl.pallas_call(
        kernel,
        out_shape=jax.ShapeDtypeStruct((dim_out, padded_B), jnp.float32),
        grid=grid,
        in_specs=[
            pl.BlockSpec((TB, dim), lambda i: (i, 0)),        # u   (streamed, HBM-contiguous)
            pl.BlockSpec((hid, dim), lambda i: (0, 0)),       # W1  (resident)
            pl.BlockSpec((hid, 1), lambda i: (0, 0)),         # b1
            pl.BlockSpec((hid, hid), lambda i: (0, 0)),       # W2
            pl.BlockSpec((hid, 1), lambda i: (0, 0)),         # b2
            pl.BlockSpec((dim_out, hid), lambda i: (0, 0)),   # W3
            pl.BlockSpec((dim_out, 1), lambda i: (0, 0)),     # b3
        ],
        out_specs=pl.BlockSpec((dim_out, TB), lambda i: (0, i)),
        compiler_params=pltpu.CompilerParams(
            dimension_semantics=("parallel",),                # megacore on v7x
            vmem_limit_bytes=vmem_limit),
    )(u_in, w1, b1, w2, b2, w3, b3)

    return outT[:, :B].T                                      # [B, dim_out]


def init_params(key, dim, dim_out):
    """Deterministic init mimicking nn.Linear's U(-1/sqrt(fan_in), ...).

    Weights in PyTorch layout [out_features, in_features], biases [out, 1].
    linearR exists in __init__ but is unused in forward(); initialized for
    shape fidelity, never passed to the kernel.
    """
    hid = dim * 2
    keys = jax.random.split(key, 8)

    def lin(kw, kb, fan_in, fan_out):
        bound = 1.0 / jnp.sqrt(jnp.float32(fan_in))
        W = jax.random.uniform(kw, (fan_out, fan_in), jnp.float32, -bound, bound)
        b = jax.random.uniform(kb, (fan_out, 1), jnp.float32, -bound, bound)
        return W, b

    W1, b1 = lin(keys[0], keys[1], dim, hid)
    W2, b2 = lin(keys[2], keys[3], hid, hid)
    W3, b3 = lin(keys[4], keys[5], hid, dim_out)
    WR, bR = lin(keys[6], keys[7], dim, dim_out)   # unused in forward
    return {"W1": W1, "b1": b1, "W2": W2, "b2": b2,
            "W3": W3, "b3": b3, "WR": WR, "bR": bR}


def reference_forward(u, p):
    v = jnp.tanh(u @ p["W1"].T + p["b1"][:, 0])
    v = jnp.tanh(v @ p["W2"].T + p["b2"][:, 0])
    return v @ p["W3"].T + p["b3"][:, 0]


if __name__ == "__main__":
    B, dim, dim_out = 8, 32, 16

    key = jax.random.PRNGKey(0)
    k_u, k_p, k_u2 = jax.random.split(key, 3)
    u = jax.random.normal(k_u, (B, dim), dtype=jnp.float32)
    params = init_params(k_p, dim, dim_out)

    # Small-batch call, explicit f32 MXU inputs (tight numerics, 1 grid step).
    out = jax.block_until_ready(
        scalar_corrector_forward(u, params, mxu_dtype=jnp.float32))
    ref = reference_forward(u, params)
    assert out.shape == (B, dim_out)
    assert jnp.allclose(out, ref, atol=1e-4, rtol=1e-4), "mismatch vs reference"

    # Multi-step streamed grid: batch not a multiple of the tile, f32 path.
    B2 = 300
    u2 = jax.random.normal(k_u2, (B2, dim), dtype=jnp.float32)
    out2 = jax.block_until_ready(
        scalar_corrector_forward(u2, params, batch_tile=256,
                                 mxu_dtype=jnp.float32))
    ref2 = reference_forward(u2, params)
    assert out2.shape == (B2, dim_out)
    assert jnp.allclose(out2, ref2, atol=1e-4, rtol=1e-4), "grid mismatch"

    # Default path: auto dtype (bf16 MXU inputs on v6e/v7x, f32 on v5e/older).
    out_auto = jax.block_until_ready(scalar_corrector_forward(u2, params))
    assert out_auto.shape == (B2, dim_out)
    assert float(jnp.max(jnp.abs(out_auto - ref2))) < 0.1, "auto path diverged"

    print("KERNEL_OK")
</pallas_src>

<mosaic_0001>
module attributes {stable_mosaic.version = 11 : i64} {
  func.func @scalar_corrector_kernel(%arg0: i32, %arg1: memref<128x32xf32, #tpu.memory_space<vmem>>, %arg2: memref<64x32xf32, #tpu.memory_space<vmem>>, %arg3: memref<64x1xf32, #tpu.memory_space<vmem>>, %arg4: memref<64x64xf32, #tpu.memory_space<vmem>>, %arg5: memref<64x1xf32, #tpu.memory_space<vmem>>, %arg6: memref<16x64xf32, #tpu.memory_space<vmem>>, %arg7: memref<16x1xf32, #tpu.memory_space<vmem>>, %arg8: memref<16x128xf32, #tpu.memory_space<vmem>>) attributes {dimension_semantics = [#tpu.dimension_semantics<parallel>], iteration_bounds = array<i64: 1>, scalar_prefetch = 0 : i64, scratch_operands = 0 : i64, tpu.core_type = #tpu.core_type<tc>, window_params = [{transform_indices = @transform_0, window_bounds = array<i64: 128, 32>}, {pipeline_mode = #tpu.pipeline_mode<synchronous>, transform_indices = @transform_1, window_bounds = array<i64: 64, 32>}, {pipeline_mode = #tpu.pipeline_mode<synchronous>, transform_indices = @transform_2, window_bounds = array<i64: 64, 1>}, {pipeline_mode = #tpu.pipeline_mode<synchronous>, transform_indices = @transform_3, window_bounds = array<i64: 64, 64>}, {pipeline_mode = #tpu.pipeline_mode<synchronous>, transform_indices = @transform_4, window_bounds = array<i64: 64, 1>}, {pipeline_mode = #tpu.pipeline_mode<synchronous>, transform_indices = @transform_5, window_bounds = array<i64: 16, 64>}, {pipeline_mode = #tpu.pipeline_mode<synchronous>, transform_indices = @transform_6, window_bounds = array<i64: 16, 1>}, {transform_indices = @transform_7, window_bounds = array<i64: 16, 128>}]} {
    %c0 = arith.constant 0 : index
    %c0_0 = arith.constant 0 : index
    %0 = vector.load %arg1[%c0, %c0_0] : memref<128x32xf32, #tpu.memory_space<vmem>>, vector<128x32xf32>
    %c0_1 = arith.constant 0 : index
    %c0_2 = arith.constant 0 : index
    %1 = vector.load %arg2[%c0_1, %c0_2] : memref<64x32xf32, #tpu.memory_space<vmem>>, vector<64x32xf32>
    %2 = tpu.transpose %0, [1, 0] : vector<128x32xf32> -> vector<32x128xf32>
    %cst = arith.constant dense<0.000000e+00> : vector<64x128xf32>
    %3 = tpu.matmul %1, %2, %cst {dimension_numbers = #tpu.dot_dimension_numbers<[1], [0], [0], [1], [0, 0, 1, 1], [], []>} : vector<64x32xf32>, vector<32x128xf32>, vector<64x128xf32> -> vector<64x128xf32>
    %c0_3 = arith.constant 0 : index
    %c0_4 = arith.constant 0 : index
    %4 = vector.load %arg3[%c0_3, %c0_4] : memref<64x1xf32, #tpu.memory_space<vmem>>, vector<64x1xf32>
    %5 = vector.broadcast %4 : vector<64x1xf32> to vector<64x128xf32>
    %6 = arith.addf %3, %5 : vector<64x128xf32>
    %7 = math.tanh %6 : vector<64x128xf32>
    %c0_5 = arith.constant 0 : index
    %c0_6 = arith.constant 0 : index
    %8 = vector.load %arg4[%c0_5, %c0_6] : memref<64x64xf32, #tpu.memory_space<vmem>>, vector<64x64xf32>
    %cst_7 = arith.constant dense<0.000000e+00> : vector<64x128xf32>
    %9 = tpu.matmul %8, %7, %cst_7 {dimension_numbers = #tpu.dot_dimension_numbers<[1], [0], [0], [1], [0, 0, 1, 1], [], []>} : vector<64x64xf32>, vector<64x128xf32>, vector<64x128xf32> -> vector<64x128xf32>
    %c0_8 = arith.constant 0 : index
    %c0_9 = arith.constant 0 : index
    %10 = vector.load %arg5[%c0_8, %c0_9] : memref<64x1xf32, #tpu.memory_space<vmem>>, vector<64x1xf32>
    %11 = vector.broadcast %10 : vector<64x1xf32> to vector<64x128xf32>
    %12 = arith.addf %9, %11 : vector<64x128xf32>
    %13 = math.tanh %12 : vector<64x128xf32>
    %c0_10 = arith.constant 0 : index
    %c0_11 = arith.constant 0 : index
    %14 = vector.load %arg6[%c0_10, %c0_11] : memref<16x64xf32, #tpu.memory_space<vmem>>, vector<16x64xf32>
    %cst_12 = arith.constant dense<0.000000e+00> : vector<16x128xf32>
    %15 = tpu.matmul %14, %13, %cst_12 {dimension_numbers = #tpu.dot_dimension_numbers<[1], [0], [0], [1], [0, 0, 1, 1], [], []>} : vector<16x64xf32>, vector<64x128xf32>, vector<16x128xf32> -> vector<16x128xf32>
    %c0_13 = arith.constant 0 : index
    %c0_14 = arith.constant 0 : index
    %16 = vector.load %arg7[%c0_13, %c0_14] : memref<16x1xf32, #tpu.memory_space<vmem>>, vector<16x1xf32>
    %17 = vector.broadcast %16 : vector<16x1xf32> to vector<16x128xf32>
    %18 = arith.addf %15, %17 : vector<16x128xf32>
    %c0_15 = arith.constant 0 : index
    %c0_16 = arith.constant 0 : index
    %19 = vector.load %arg8[%c0_15, %c0_16] : memref<16x128xf32, #tpu.memory_space<vmem>>, vector<16x128xf32>
    tpu.vector_store %arg8[%c0_15, %c0_16], %18 {strides = array<i32>} : memref<16x128xf32, #tpu.memory_space<vmem>>, vector<16x128xf32>,
    return
  }
  func.func @transform_0(%arg0: i32) -> (i32, i32) {
    %c0_i32 = arith.constant 0 : i32
    %c0_i32_0 = arith.constant 0 : i32
    return %arg0, %c0_i32 : i32, i32
  }
  func.func @transform_1(%arg0: i32) -> (i32, i32) {
    %c0_i32 = arith.constant 0 : i32
    %c0_i32_0 = arith.constant 0 : i32
    %c0_i32_1 = arith.constant 0 : i32
    return %c0_i32, %c0_i32_0 : i32, i32
  }
  func.func @transform_2(%arg0: i32) -> (i32, i32) {
    %c0_i32 = arith.constant 0 : i32
    %c0_i32_0 = arith.constant 0 : i32
    %c0_i32_1 = arith.constant 0 : i32
    return %c0_i32, %c0_i32_0 : i32, i32
  }
  func.func @transform_3(%arg0: i32) -> (i32, i32) {
    %c0_i32 = arith.constant 0 : i32
    %c0_i32_0 = arith.constant 0 : i32
    %c0_i32_1 = arith.constant 0 : i32
    return %c0_i32, %c0_i32_0 : i32, i32
  }
  func.func @transform_4(%arg0: i32) -> (i32, i32) {
    %c0_i32 = arith.constant 0 : i32
    %c0_i32_0 = arith.constant 0 : i32
    %c0_i32_1 = arith.constant 0 : i32
    return %c0_i32, %c0_i32_0 : i32, i32
  }
  func.func @transform_5(%arg0: i32) -> (i32, i32) {
    %c0_i32 = arith.constant 0 : i32
    %c0_i32_0 = arith.constant 0 : i32
    %c0_i32_1 = arith.constant 0 : i32
    return %c0_i32, %c0_i32_0 : i32, i32
  }
  func.func @transform_6(%arg0: i32) -> (i32, i32) {
    %c0_i32 = arith.constant 0 : i32
    %c0_i32_0 = arith.constant 0 : i32
    %c0_i32_1 = arith.constant 0 : i32
    return %c0_i32, %c0_i32_0 : i32, i32
  }
  func.func @transform_7(%arg0: i32) -> (i32, i32) {
    %c0_i32 = arith.constant 0 : i32
    %c0_i32_0 = arith.constant 0 : i32
    return %c0_i32, %arg0 : i32, i32
  }
}

</mosaic_0001>

<bundles_post_ra>
// kernel: scalar_corrector_forward.1
= control target key start
LH: loop header
LB: loop body
LE: loop exit
PB: predicated region body
PF: predicated region fallthrough
CT: control target
= control target key end

     0   :  { %vm98_vm0 = vcmask 261120   ;;  %v789_v2 = vmov 0   ;;  %vm340_vm1 = vcmask 523264   ;;  %s1042_s0 = inlined_call_operand.vmem [shape: f32[128,32], index: 0, kind: input, shape index: {}]   ;;  %s1043_s1 = inlined_call_operand.vmem [shape: f32[64,32], index: 1, kind: input, shape index: {}]   ;;  %s1044_s2 = inlined_call_operand.vmem [shape: f32[64,1], index: 2, kind: input, shape index: {}]   ;;  %s1045_s4 = inlined_call_operand.vmem [shape: f32[64,1], index: 4, kind: input, shape index: {}]   ;;  %s1046_s6 = inlined_call_operand.vmem [shape: f32[16,1], index: 6, kind: input, shape index: {}]   ;;  %s1047_s3 = inlined_call_operand.vmem [shape: f32[64,64], index: 3, kind: input, shape index: {}]   ;;  %s1048_s5 = inlined_call_operand.vmem [shape: f32[16,64], index: 5, kind: input, shape index: {}]   ;;  %s1049_s7 = inlined_call_operand.vmem [shape: f32[16,128], index: 7, kind: output, shape index: {}]  }
   0x1   :  { %v41_v0 = vld [vmem:[%s1042_s0 + $0x78] sm:$0xff]  ;;  %v40_v1 = vld [vmem:[%s1042_s0 + $0x70] sm:$0xff]  ;;  %755 = vset.pattern.permute.xlu0 %v789_v2  ;;  %756 = vset.pattern.permute.xlu1 %v789_v2  ;;  %v39_v3 = vld [vmem:[%s1042_s0 + $0x68] sm:$0xff] }
   0x2   :  { %663 = vmatprep.subr.msk.mxu0 %vm98_vm0, %v41_v0  ;;  %v42_v4 = vld [vmem:[%s1043_s1] sm:$0xff]  ;;  %v57_v6 = vld [vmem:[%s1044_s2 + $0x38] sm:$0xff]  ;;  %v55_v7 = vld [vmem:[%s1044_s2 + $0x28] sm:$0xff] }
   0x3   :  { %664 = vmatpush3.xpose.msk.msra.mxu0 %vm98_vm0, %v41_v0  ;;  %695 = vmatprep.mubr.msk.f32.mxu0 %vm98_vm0, %v42_v4  ;;  %v38_v5 = vld [vmem:[%s1042_s0 + $0x60] sm:$0xff]  ;;  %v56_v8 = vld [vmem:[%s1044_s2 + $0x30] sm:$0xff]  ;;  %v37_v10 = vld [vmem:[%s1042_s0 + $0x58] sm:$0xff] }
   0x4   :  { %665 = vmatprep.subr.msk.mxu0 %vm98_vm0, %v40_v1  ;;  %95 = vperm.xlu0 %755, %v57_v6   ;;  %v54_v9 = vld [vmem:[%s1044_s2 + $0x20] sm:$0xff]  ;;  %v53_v11 = vld [vmem:[%s1044_s2 + $0x18] sm:$0xff]  ;;  %v52_v12 = vld [vmem:[%s1044_s2 + $0x10] sm:$0xff] }
   0x5   :  { %85 = vperm.xlu1 %756, %v55_v7   ;;  %v36_v13 = vld [vmem:[%s1042_s0 + $0x50] sm:$0xff]  ;;  %v51_v14 = vld [vmem:[%s1044_s2 + $0x8] sm:$0xff]  ;;  %v50_v15 = vld [vmem:[%s1044_s2] sm:$0xff] }
   0x6   :  { %v35_v16 = vld [vmem:[%s1042_s0 + $0x48] sm:$0xff]  ;;  %v299_v17 = vld [vmem:[%s1045_s4 + $0x38] sm:$0xff]  ;;  %v298_v18 = vld [vmem:[%s1045_s4 + $0x30] sm:$0xff] }
   0x7   :  { %666 = vmatpush3.xpose.msk.msra.mxu0 %vm98_vm0, %v40_v1  ;;  %v34_v19 = vld [vmem:[%s1042_s0 + $0x40] sm:$0xff]  ;;  %v297_v20 = vld [vmem:[%s1045_s4 + $0x28] sm:$0xff]  ;;  %v33_v22 = vld [vmem:[%s1042_s0 + $0x38] sm:$0xff] }
   0x8   :  { %667 = vmatprep.subr.msk.mxu0 %vm98_vm0, %v39_v3  ;;  %90 = vperm.xlu0 %755, %v56_v8   ;;  %v296_v21 = vld [vmem:[%s1045_s4 + $0x20] sm:$0xff]  ;;  %v295_v23 = vld [vmem:[%s1045_s4 + $0x18] sm:$0xff]  ;;  %v294_v24 = vld [vmem:[%s1045_s4 + $0x10] sm:$0xff] }
   0x9   :  { %80 = vperm.xlu1 %756, %v54_v9   ;;  %v32_v25 = vld [vmem:[%s1042_s0 + $0x30] sm:$0xff]  ;;  %v293_v26 = vld [vmem:[%s1045_s4 + $0x8] sm:$0xff]  ;;  %v292_v27 = vld [vmem:[%s1045_s4] sm:$0xff] }
   0xa   :  { %v31_v28 = vld [vmem:[%s1042_s0 + $0x28] sm:$0xff]  ;;  %v480_v29 = vld [vmem:[%s1046_s6] sm:$0xff]  ;;  %v29_v32 = vld [vmem:[%s1042_s0 + $0x18] sm:$0xff] }
   0xb   :  { %668 = vmatpush3.xpose.msk.msra.mxu0 %vm98_vm0, %v39_v3  ;;  %v481_v30 = vld [vmem:[%s1046_s6 + $0x8] sm:$0xff]  ;;  %v30_v31 = vld [vmem:[%s1042_s0 + $0x20] sm:$0xff]  ;;  %v28_v33 = vld [vmem:[%s1042_s0 + $0x10] sm:$0xff] }
   0xc   :  { %669 = vmatprep.subr.msk.mxu0 %vm98_vm0, %v38_v5  ;;  %75 = vperm.xlu0 %755, %v53_v11   ;;  %v27_v34 = vld [vmem:[%s1042_s0 + $0x8] sm:$0xff]  ;;  %v26_v35 = vld [vmem:[%s1042_s0] sm:$0xff]  ;;  %v44_v37 = vld [vmem:[%s1043_s1 + $0x10] sm:$0xff] }
   0xd   :  { %70 = vperm.xlu1 %756, %v52_v12   ;;  %v43_v36 = vld [vmem:[%s1043_s1 + $0x8] sm:$0xff]  ;;  %v45_v38 = vld [vmem:[%s1043_s1 + $0x18] sm:$0xff]  ;;  %v46_v39 = vld [vmem:[%s1043_s1 + $0x20] sm:$0xff] }
   0xe   :  { %v47_v40 = vld [vmem:[%s1043_s1 + $0x28] sm:$0xff]  ;;  %v48_v41 = vld [vmem:[%s1043_s1 + $0x30] sm:$0xff]  ;;  %v49_v42 = vld [vmem:[%s1043_s1 + $0x38] sm:$0xff] }
   0xf   :  { %670 = vmatpush3.xpose.msk.msra.mxu0 %vm98_vm0, %v38_v5  ;;  %v284_v43 = vld [vmem:[%s1047_s3] sm:$0xff]  ;;  %v285_v12 = vld [vmem:[%s1047_s3 + $0x8] sm:$0xff] }
  0x10   :  { %671 = vmatprep.subr.msk.mxu0 %vm98_vm0, %v37_v10  ;;  %65 = vperm.xlu0 %755, %v51_v14   ;;  %v287_v14 = vld [vmem:[%s1047_s3 + $0x18] sm:$0xff] }
  0x11   :  { %60 = vperm.xlu1 %756, %v50_v15   ;;  %723 = vmatprep.mubr.msk.f32.mxu1 %vm340_vm1, %v284_v43  ;;  %v288_v15 = vld [vmem:[%s1047_s3 + $0x20] sm:$0xff] }
  0x13   :  { %672 = vmatpush3.xpose.msk.msra.mxu0 %vm98_vm0, %v37_v10 }
  0x14   :  { %673 = vmatprep.subr.msk.mxu0 %vm98_vm0, %v36_v13  ;;  %337 = vperm.xlu0 %755, %v299_v17   ;;  %v290_v17 = vld [vmem:[%s1047_s3 + $0x30] sm:$0xff] }
  0x15   :  { %332 = vperm.xlu1 %756, %v298_v18   ;;  %v291_v18 = vld [vmem:[%s1047_s3 + $0x38] sm:$0xff] }
  0x17   :  { %674 = vmatpush3.xpose.msk.msra.mxu0 %vm98_vm0, %v36_v13  ;;  %v286_v13 = vld [vmem:[%s1047_s3 + $0x10] sm:$0xff] }
  0x18   :  { %675 = vmatprep.subr.msk.mxu0 %vm98_vm0, %v35_v16  ;;  %327 = vperm.xlu0 %755, %v297_v20  }
  0x19   :  { %322 = vperm.xlu1 %756, %v296_v21  }
  0x1b   :  { %676 = vmatpush3.xpose.msk.msra.mxu0 %vm98_vm0, %v35_v16  ;;  %v289_v16 = vld [vmem:[%s1047_s3 + $0x28] sm:$0xff] }
  0x1c   :  { %677 = vmatprep.subr.msk.mxu0 %vm98_vm0, %v34_v19  ;;  %317 = vperm.xlu0 %755, %v295_v23  }
  0x1d   :  { %312 = vperm.xlu1 %756, %v294_v24  }
  0x1f   :  { %678 = vmatpush3.xpose.msk.msra.mxu0 %vm98_vm0, %v34_v19  ;;  %v478_v19 = vld [vmem:[%s1048_s5] sm:$0xff] }
  0x20   :  { %679 = vmatprep.subr.msk.mxu0 %vm98_vm0, %v33_v22  ;;  %307 = vperm.xlu0 %755, %v293_v26  }
  0x21   :  { %302 = vperm.xlu1 %756, %v292_v27  }
  0x23   :  { %680 = vmatpush3.xpose.msk.msra.mxu0 %vm98_vm0, %v33_v22 }
  0x24   :  { %681 = vmatprep.subr.msk.mxu0 %vm98_vm0, %v32_v25  ;;  %484 = vperm.xlu0 %755, %v480_v29  }
  0x25   :  { %489 = vperm.xlu1 %756, %v481_v30  }
  0x27   :  { %682 = vmatpush3.xpose.msk.msra.mxu0 %vm98_vm0, %v32_v25 }
  0x28   :  { %683 = vmatprep.subr.msk.mxu0 %vm98_vm0, %v31_v28 }
  0x2b   :  { %684 = vmatpush3.xpose.msk.msra.mxu0 %vm98_vm0, %v31_v28 }
  0x2c   :  { %685 = vmatprep.subr.msk.mxu0 %vm98_vm0, %v30_v31 }
  0x2f   :  { %686 = vmatpush3.xpose.msk.msra.mxu0 %vm98_vm0, %v30_v31 }
  0x30   :  { %687 = vmatprep.subr.msk.mxu0 %vm98_vm0, %v29_v32 }
  0x33   :  { %688 = vmatpush3.xpose.msk.msra.mxu0 %vm98_vm0, %v29_v32 }
  0x34   :  { %689 = vmatprep.subr.msk.mxu0 %vm98_vm0, %v28_v33 }
  0x37   :  { %690 = vmatpush3.xpose.msk.msra.mxu0 %vm98_vm0, %v28_v33 }
  0x38   :  { %691 = vmatprep.subr.msk.mxu0 %vm98_vm0, %v27_v34 }
  0x3b   :  { %692 = vmatpush3.xpose.msk.msra.mxu0 %vm98_vm0, %v27_v34 }
  0x3c   :  { %693 = vmatprep.subr.msk.mxu0 %vm98_vm0, %v26_v35 }
  0x3f   :  { %694 = vmatpush3.xpose.msk.msra.mxu0 %vm98_vm0, %v26_v35 }
  0x42   :  { %696 = vmatmul.mubr.msk.f32.vlgmr.msra.gmra.mxu0 %vm98_vm0, %v43_v36 }
  0x43   :  { %698 = vmatprep.mubr.msk.f32.mxu0 %vm98_vm0, %v44_v37 }
  0x46   :  { %699 = vmatmul.mubr.msk.f32.gmra.mxu0 %vm98_vm0, %v45_v38 }
  0x47   :  { %701 = vmatprep.mubr.msk.f32.mxu0 %vm98_vm0, %v46_v39 }
  0x4a   :  { %702 = vmatmul.mubr.msk.f32.gmra.mxu0 %vm98_vm0, %v47_v40 }
  0x4b   :  { %704 = vmatprep.mubr.msk.f32.mxu0 %vm98_vm0, %v48_v41 }
  0x4e   :  { %705 = vmatmul.mubr.msk.f32.gmra.mxu0 %vm98_vm0, %v49_v42 }
  0x7f   :  { %v96_v46 = vpop.permute.xlu0 %95 }
  0x80   :  { %v86_v48 = vpop.permute.xlu1 %85 }
  0x83   :  { %v91_v51 = vpop.permute.xlu0 %90 }
  0x84   :  { %v81_v53 = vpop.permute.xlu1 %80 }
  0x87   :  { %v76_v59 = vpop.permute.xlu0 %75 }
  0x88   :  { %v71_v61 = vpop.permute.xlu1 %70 }
  0x8b   :  { %v66_v0 = vpop.permute.xlu0 %65 }
  0x8c   :  { %v61_v2 = vpop.permute.xlu1 %60 }
  0x8f   :  { %v338_v22 = vpop.permute.xlu0 %337 }
  0x90   :  { %v333_v24 = vpop.permute.xlu1 %332 }
  0x93   :  { %v328_v27 = vpop.permute.xlu0 %327 }
  0x94   :  { %v323_v29 = vpop.permute.xlu1 %322 }
  0x97   :  { %v318_v35 = vpop.permute.xlu0 %317 }
  0x98   :  { %v313_v37 = vpop.permute.xlu1 %312 }
  0x9b   :  { %v308_v40 = vpop.permute.xlu0 %307 }
  0x9c   :  { %v303_v42 = vpop.permute.xlu1 %302 }
 0x102   :  { %v697_v44 = vpop.f32.mrf.mxu0 }
 0x103   :  { %v243_v1 = vadd.f32 %v697_v44, %v66_v0 }
 0x104   :  { %v237_v45 = vpop.f32.mrf.mxu0 }
 0x105   :  { %v238_v3 = vadd.f32 %v237_v45, %v61_v2 }
 0x106   :  { %v700_v47 = vpop.f32.mrf.mxu0 }
 0x107   :  { %v253_v62 = vadd.f32 %v700_v47, %v76_v59 }
 0x108   :  { %v247_v49 = vpop.f32.mrf.mxu0 }
 0x109   :  { %v248_v63 = vadd.f32 %v247_v49, %v71_v61 }
 0x10a   :  { %v703_v50 = vpop.f32.mrf.mxu0 }
 0x10b   :  { %v263_v57 = vadd.f32 %v703_v50, %v86_v48 }
 0x10c   :  { %v257_v52 = vpop.f32.mrf.mxu0 }
 0x10d   :  { %v258_v60 = vadd.f32 %v257_v52, %v81_v53  ;;  %v479_v52 = vld [vmem:[%s1048_s5 + $0x8] sm:$0xff]  ;;  %v490_v53 = vpop.permute.xlu1 %489 }
 0x10e   :  { %v706_v54 = vpop.f32.mrf.mxu0 }
 0x10f   :  { %v273_v55 = vadd.f32 %v706_v54, %v96_v46 }
 0x110   :  { %v267_v56 = vpop.f32.mrf.mxu0 }
 0x111   :  { %757 = vtanh.f32 %v273_v55  ;;  %v268_v58 = vadd.f32 %v267_v56, %v91_v51  ;;  %v485_v56 = vpop.permute.xlu0 %484 }
 0x113   :  { %759 = vtanh.f32 %v268_v58 }
 0x114   :  { %761 = vtanh.f32 %v263_v57 }
 0x115   :  { %763 = vtanh.f32 %v258_v60 }
 0x116   :  { %765 = vtanh.f32 %v253_v62 }
 0x117   :  { %767 = vtanh.f32 %v248_v63 }
 0x118   :  { %769 = vtanh.f32 %v243_v1 }
 0x119   :  { %771 = vtanh.f32 %v238_v3 }
 0x11e   :  { %v758_v4 = vpop.eup %757 }
 0x11f   :  { %707 = vmatprep.subr.mxu1 %v758_v4 }
 0x120   :  { %v760_v5 = vpop.eup %759  ;;  %708 = vmatpush3.msra.mxu1 %v758_v4 }
 0x121   :  { %709 = vmatprep.subr.mxu1 %v760_v5  ;;  %v762_v6 = vpop.eup %761 }
 0x122   :  { %710 = vmatpush3.msra.mxu1 %v760_v5  ;;  %v764_v7 = vpop.eup %763 }
 0x123   :  { %711 = vmatprep.subr.mxu1 %v762_v6  ;;  %v766_v8 = vpop.eup %765 }
 0x124   :  { %712 = vmatpush3.msra.mxu1 %v762_v6  ;;  %v768_v9 = vpop.eup %767 }
 0x125   :  { %713 = vmatprep.subr.mxu1 %v764_v7  ;;  %v770_v10 = vpop.eup %769 }
 0x126   :  { %714 = vmatpush3.msra.mxu1 %v764_v7  ;;  %v772_v11 = vpop.eup %771 }
 0x127   :  { %715 = vmatprep.subr.mxu1 %v766_v8 }
 0x128   :  { %716 = vmatpush3.msra.mxu1 %v766_v8 }
 0x129   :  { %717 = vmatprep.subr.mxu1 %v768_v9 }
 0x12a   :  { %718 = vmatpush3.msra.mxu1 %v768_v9 }
 0x12b   :  { %719 = vmatprep.subr.mxu1 %v770_v10 }
 0x12c   :  { %720 = vmatpush3.msra.mxu1 %v770_v10 }
 0x12d   :  { %721 = vmatprep.subr.mxu1 %v772_v11 }
 0x12e   :  { %722 = vmatpush3.msra.mxu1 %v772_v11 }
 0x12f   :  { %724 = vmatmul.mubr.msk.f32.vlgmr.msra.gmra.mxu1 %vm340_vm1, %v285_v12 }
 0x130   :  { %726 = vmatprep.mubr.msk.f32.mxu1 %vm340_vm1, %v286_v13 }
 0x133   :  { %727 = vmatmul.mubr.msk.f32.gmra.mxu1 %vm340_vm1, %v287_v14 }
 0x134   :  { %729 = vmatprep.mubr.msk.f32.mxu1 %vm340_vm1, %v288_v15 }
 0x137   :  { %730 = vmatmul.mubr.msk.f32.gmra.mxu1 %vm340_vm1, %v289_v16 }
 0x138   :  { %732 = vmatprep.mubr.msk.f32.mxu1 %vm340_vm1, %v290_v17 }
 0x13b   :  { %733 = vmatmul.mubr.msk.f32.gmra.mxu1 %vm340_vm1, %v291_v18 }
 0x13c   :  { %751 = vmatprep.mubr.msk.f32.mxu1 %vm340_vm1, %v478_v19 }
 0x1ef   :  { %v725_v20 = vpop.f32.mrf.mxu1 }
 0x1f0   :  { %v437_v41 = vadd.f32 %v725_v20, %v308_v40 }
 0x1f1   :  { %v431_v21 = vpop.f32.mrf.mxu1 }
 0x1f2   :  { %v432_v43 = vadd.f32 %v431_v21, %v303_v42 }
 0x1f3   :  { %v728_v23 = vpop.f32.mrf.mxu1 }
 0x1f4   :  { %v447_v38 = vadd.f32 %v728_v23, %v318_v35 }
 0x1f5   :  { %v441_v25 = vpop.f32.mrf.mxu1 }
 0x1f6   :  { %v442_v39 = vadd.f32 %v441_v25, %v313_v37 }
 0x1f7   :  { %v731_v26 = vpop.f32.mrf.mxu1 }
 0x1f8   :  { %v457_v33 = vadd.f32 %v731_v26, %v328_v27 }
 0x1f9   :  { %v451_v28 = vpop.f32.mrf.mxu1 }
 0x1fa   :  { %v452_v36 = vadd.f32 %v451_v28, %v323_v29 }
 0x1fb   :  { %v734_v30 = vpop.f32.mrf.mxu1 }
 0x1fc   :  { %v467_v31 = vadd.f32 %v734_v30, %v338_v22 }
 0x1fd   :  { %v461_v32 = vpop.f32.mrf.mxu1 }
 0x1fe   :  { %773 = vtanh.f32 %v467_v31  ;;  %v462_v34 = vadd.f32 %v461_v32, %v333_v24 }
 0x200   :  { %775 = vtanh.f32 %v462_v34 }
 0x201   :  { %777 = vtanh.f32 %v457_v33 }
 0x202   :  { %779 = vtanh.f32 %v452_v36 }
 0x203   :  { %781 = vtanh.f32 %v447_v38 }
 0x204   :  { %783 = vtanh.f32 %v442_v39 }
 0x205   :  { %785 = vtanh.f32 %v437_v41 }
 0x206   :  { %787 = vtanh.f32 %v432_v43 }
 0x20b   :  { %v774_v44 = vpop.eup %773 }
 0x20c   :  { %735 = vmatprep.subr.mxu1 %v774_v44 }
 0x20d   :  { %v776_v45 = vpop.eup %775  ;;  %736 = vmatpush3.msra.mxu1 %v774_v44 }
 0x20e   :  { %737 = vmatprep.subr.mxu1 %v776_v45  ;;  %v778_v46 = vpop.eup %777 }
 0x20f   :  { %738 = vmatpush3.msra.mxu1 %v776_v45  ;;  %v780_v47 = vpop.eup %779 }
 0x210   :  { %739 = vmatprep.subr.mxu1 %v778_v46  ;;  %v782_v48 = vpop.eup %781 }
 0x211   :  { %740 = vmatpush3.msra.mxu1 %v778_v46  ;;  %v784_v49 = vpop.eup %783 }
 0x212   :  { %741 = vmatprep.subr.mxu1 %v780_v47  ;;  %v786_v50 = vpop.eup %785 }
 0x213   :  { %742 = vmatpush3.msra.mxu1 %v780_v47  ;;  %v788_v51 = vpop.eup %787 }
 0x214   :  { %743 = vmatprep.subr.mxu1 %v782_v48 }
 0x215   :  { %744 = vmatpush3.msra.mxu1 %v782_v48 }
 0x216   :  { %745 = vmatprep.subr.mxu1 %v784_v49 }
 0x217   :  { %746 = vmatpush3.msra.mxu1 %v784_v49 }
 0x218   :  { %747 = vmatprep.subr.mxu1 %v786_v50 }
 0x219   :  { %748 = vmatpush3.msra.mxu1 %v786_v50 }
 0x21a   :  { %749 = vmatprep.subr.mxu1 %v788_v51 }
 0x21b   :  { %750 = vmatpush3.msra.mxu1 %v788_v51 }
 0x21c   :  { %752 = vmatmul.mubr.msk.f32.vlgmr.msra.gmra.mxu1 %vm340_vm1, %v479_v52 }
 0x2dc   :  { %v753_v54 = vpop.f32.mrf.mxu1 }
 0x2dd   :  { %v570_v55 = vadd.f32 %v753_v54, %v490_v53 }
 0x2de   :  { %v564_v57 = vpop.f32.mrf.mxu1 }
 0x2df   :  { %574 = vst [vmem:[%s1049_s7 + $0x8] sm:$0xff] %v570_v55  ;;  %v565_v58 = vadd.f32 %v564_v57, %v485_v56 }
 0x2e1   :  { %573 = vst [vmem:[%s1049_s7] sm:$0xff] %v565_v58 }

</bundles_post_ra>
